<compile_context>
chip_gen: v7x
topology: tpu7x:2x2x1
jax: 0.10.0
libtpu: 0.0.40
codegen_flags: <defaults>
</compile_context>

<pallas_src>
import functools

import jax
import jax.numpy as jnp
from jax.experimental import pallas as pl
from jax.experimental.pallas import tpu as pltpu


def _round_up(v, m):
    return ((v + m - 1) // m) * m


def _gpt_fused_kernel_t(xt_ref, weffT_ref, beffT_ref, w2T_ref, b2T_ref,
                        w3T_ref, b3T_ref, o_ref):
    """All M modes fused, transposed (column-major batch) layout.

    xt_ref   : (D0, TN)   input tile, lane-dense in the batch dim
    weffT_ref: (MH, D0)   folded (shift + layer-1) weights, transposed
    beffT_ref: (MH, 1)
    w2T_ref  : (MH, MH)   block-diagonal layer-2, transposed
    b2T_ref  : (MH, 1)
    w3T_ref  : (OUT, MH)  c-folded layer-3, transposed
    b3T_ref  : (OUT, 1)
    o_ref    : (OUT, TN)  output tile, lane-dense in the batch dim
    """
    xt = xt_ref[...]                     # (D0, TN)
    weffT = weffT_ref[...]               # (MH, D0)
    d0 = xt.shape[0]

    # Folded (shift + P_i layer-1) linear.  K = D0 is tiny (3): do D0 VPU
    # broadcast-FMAs (outer products) instead of a ~2%-occupancy MXU push.
    pre = weffT[:, 0:1] * xt[0:1, :]                      # (MH, TN)
    for k in range(1, d0):                                # static, unrolled at trace time
        pre = pre + weffT[:, k:k + 1] * xt[k:k + 1, :]
    h = jnp.tanh(pre + beffT_ref[...])                    # (MH, TN)

    # Block-diagonal layer-2 of all modes: a single (MH, MH) MXU matmul.
    h = jnp.tanh(jnp.dot(w2T_ref[...], h, preferred_element_type=jnp.float32)
                 + b2T_ref[...])                          # (MH, TN)

    # Layer-3 with the shared head coefficients c folded in: (OUT, MH) @ (MH, TN).
    o_ref[...] = (jnp.dot(w3T_ref[...], h, preferred_element_type=jnp.float32)
                  + b3T_ref[...]).astype(o_ref.dtype)     # (OUT, TN)


def fuse_gpt_params(wshift, bshift, w1, b1, w2, b2, w3, b3, c_initial):
    """Exact wrapper-side reformulation of the per-mode GPT parameters.

    Returns transposed, lane-dense fused parameters consumed by the kernel.
    """
    M, D0, H = w1.shape
    # Fold the shift Linear into P_i's first layer (composition of two linears).
    weff = jnp.einsum('mde,meh->mdh', wshift, w1)                        # (M, D0, H)
    beff = jnp.einsum('mre,meh->mrh', bshift, w1) + b1                   # (M, 1, H)
    weffT = jnp.concatenate([weff[i].T for i in range(M)], axis=0)       # (M*H, D0)
    beffT = jnp.concatenate([beff[i].T for i in range(M)], axis=0)       # (M*H, 1)
    # Block-diagonal layer-2 over modes (transposed):  blockdiag(W2_i)^T = blockdiag(W2_i^T).
    # NOTE: dense block-diag is M-times redundant; fine at M*H <= ~256, revisit for larger M.
    w2T_blk = jax.scipy.linalg.block_diag(*[w2[i].T for i in range(M)])  # (M*H, M*H)
    b2T = jnp.concatenate([b2[i].T for i in range(M)], axis=0)           # (M*H, 1)
    # Fold the four shared bias-free heads (coefficients c_initial) into layer-3.
    c = c_initial.reshape(-1)                                            # (M,)
    w3T_c = jnp.concatenate([(c[i] * w3[i]).T for i in range(M)], axis=1)  # (OUT, M*H)
    b3T_c = jnp.sum(c[:, None, None] * b3, axis=0).T                     # (OUT, 1)
    return tuple(a.astype(jnp.float32)
                 for a in (weffT, beffT, w2T_blk, b2T, w3T_c, b3T_c))


@functools.partial(jax.jit, static_argnames=("block_n",))
def gpt_forward_t(x_t, fused_params, block_n=4096):
    """Transposed-native forward.  x_t: (D0, N) -> (OUT, N) float32 (zero-copy layout)."""
    weffT, beffT, w2T, b2T, w3T, b3T = fused_params
    D0, N = x_t.shape
    MH = weffT.shape[0]
    OUT = w3T.shape[0]

    # Batch tile (lane dim): as large as block_n, but keep >= 4 grid steps when N is
    # large so v7x's two TensorCores both get work (neutral on v5e/v6e).
    tn = min(block_n, _round_up(N, 128))
    if N >= 4 * 128:
        tn = min(tn, _round_up(pl.cdiv(N, 4), 128))
    npad = _round_up(N, tn)

    xf = x_t.astype(jnp.float32)
    if npad != N:
        # Only taken for ragged N; batch sizes that are multiples of 128 skip this copy.
        xf = jnp.pad(xf, ((0, 0), (0, npad - N)))

    flops = 2 * npad * (MH * D0 + MH * MH + OUT * MH)
    transcendentals = 2 * npad * MH
    bytes_accessed = 4 * (npad * (D0 + OUT)
                          + MH * D0 + MH * MH + OUT * MH + 2 * MH + OUT)

    grid_spec = pltpu.PrefetchScalarGridSpec(
        num_scalar_prefetch=0,
        grid=(npad // tn,),
        in_specs=[
            pl.BlockSpec((D0, tn), lambda i: (0, i)),     # x tile, lane-dense batch
            pl.BlockSpec((MH, D0), lambda i: (0, 0)),     # fused layer-1 W^T (resident)
            pl.BlockSpec((MH, 1), lambda i: (0, 0)),      # fused layer-1 b
            pl.BlockSpec((MH, MH), lambda i: (0, 0)),     # block-diag layer-2 W^T
            pl.BlockSpec((MH, 1), lambda i: (0, 0)),      # layer-2 b
            pl.BlockSpec((OUT, MH), lambda i: (0, 0)),    # c-folded layer-3 W^T
            pl.BlockSpec((OUT, 1), lambda i: (0, 0)),     # c-folded layer-3 b
        ],
        out_specs=pl.BlockSpec((OUT, tn), lambda i: (0, i)),
    )

    out = pl.pallas_call(
        _gpt_fused_kernel_t,
        out_shape=jax.ShapeDtypeStruct((OUT, npad), jnp.float32),
        grid_spec=grid_spec,
        compiler_params=pltpu.CompilerParams(
            dimension_semantics=("parallel",)),           # batch tiles are independent
        cost_estimate=pl.CostEstimate(flops=flops,
                                      transcendentals=transcendentals,
                                      bytes_accessed=bytes_accessed),
    )(xf, weffT, beffT, w2T, b2T, w3T, b3T)

    if npad != N:
        out = out[:, :N]
    return out


@functools.partial(jax.jit, static_argnames=("block_n",))
def gpt_forward(x, fused_params, block_n=4096):
    """Convenience wrapper matching GPT.forward: x (N, D0) -> (N, 4) float32.

    Callers that can keep their data in (D0, N) / (OUT, N) layout should use
    gpt_forward_t directly and avoid the two small transposes done here.
    """
    return gpt_forward_t(x.T, fused_params, block_n=block_n).T


if __name__ == "__main__":
    # layers = [3, 4, 1]: D0 = 3 inputs (t, x, y), M = 4 pre-trained modes, scalar heads.
    N, D0, M, H, OUT = 512, 3, 4, 32, 4

    key = jax.random.PRNGKey(0)
    kx, kx2, k1, kb1, k2, kb2, k3, kb3, kc = jax.random.split(key, 9)

    x = jax.random.normal(kx, (N, D0), dtype=jnp.float32)

    # shift layers: identity weight / zero bias (exactly as in GPT.__init__)
    wshift = jnp.tile(jnp.eye(D0, dtype=jnp.float32)[None], (M, 1, 1))   # (M, D0, D0)
    bshift = jnp.zeros((M, 1, D0), dtype=jnp.float32)                    # (M, 1, D0)

    # synthetic deterministic pre-trained PINNs P_i (tanh MLP D0 -> H -> H -> 4)
    w1 = 0.5 * jax.random.normal(k1, (M, D0, H), dtype=jnp.float32)
    b1 = 0.1 * jax.random.normal(kb1, (M, 1, H), dtype=jnp.float32)
    w2 = 0.3 * jax.random.normal(k2, (M, H, H), dtype=jnp.float32)
    b2 = 0.1 * jax.random.normal(kb2, (M, 1, H), dtype=jnp.float32)
    w3 = 0.3 * jax.random.normal(k3, (M, H, OUT), dtype=jnp.float32)
    b3 = 0.1 * jax.random.normal(kb3, (M, 1, OUT), dtype=jnp.float32)

    # c_initial (1, M): shared by all four bias-free heads, as in GPT.__init__
    c_initial = jax.random.normal(kc, (1, M), dtype=jnp.float32)

    fused = fuse_gpt_params(wshift, bshift, w1, b1, w2, b2, w3, b3, c_initial)

    # pure-JAX reference of the ORIGINAL per-mode GPT.forward semantics
    def ref_forward(xd):
        mode_outs = []
        for i in range(M):
            shift = xd @ wshift[i] + bshift[i]
            hh = jnp.tanh(shift @ w1[i] + b1[i])
            hh = jnp.tanh(hh @ w2[i] + b2[i])
            mode_outs.append(hh @ w3[i] + b3[i])                         # (N, 4)
        U = jnp.stack(mode_outs, axis=0)                                 # (M, N, 4)
        return jnp.einsum('inj,i->nj', U, c_initial[0])                  # (N, 4)

    # 1) standard (N, D0) API, N multiple of 128 -> no wrapper pad/slice, grid of 4 tiles
    out = jax.block_until_ready(gpt_forward(x, fused))
    ref = ref_forward(x)
    assert out.shape == (N, OUT) and out.dtype == jnp.float32
    err = float(jnp.max(jnp.abs(out - ref)))
    assert jnp.allclose(out, ref, atol=1e-4, rtol=1e-4), err

    # 2) ragged batch (exercises the pad-only-when-needed tail path)
    N2 = 300
    x2 = jax.random.normal(kx2, (N2, D0), dtype=jnp.float32)
    out2 = jax.block_until_ready(gpt_forward(x2, fused))
    ref2 = ref_forward(x2)
    assert out2.shape == (N2, OUT)
    err2 = float(jnp.max(jnp.abs(out2 - ref2)))
    assert jnp.allclose(out2, ref2, atol=1e-4, rtol=1e-4), err2

    print("KERNEL_OK")
</pallas_src>

<mosaic_0001>
module attributes {stable_mosaic.version = 11 : i64} {
  func.func @_gpt_fused_kernel_t(%arg0: i32, %arg1: memref<3x128xf32, #tpu.memory_space<vmem>>, %arg2: memref<128x3xf32, #tpu.memory_space<vmem>>, %arg3: memref<128x1xf32, #tpu.memory_space<vmem>>, %arg4: memref<128x128xf32, #tpu.memory_space<vmem>>, %arg5: memref<128x1xf32, #tpu.memory_space<vmem>>, %arg6: memref<4x128xf32, #tpu.memory_space<vmem>>, %arg7: memref<4x1xf32, #tpu.memory_space<vmem>>, %arg8: memref<4x128xf32, #tpu.memory_space<vmem>>) attributes {dimension_semantics = [#tpu.dimension_semantics<parallel>], iteration_bounds = array<i64: 4>, scalar_prefetch = 0 : i64, scratch_operands = 0 : i64, tpu.core_type = #tpu.core_type<tc>, window_params = [{transform_indices = @transform_0, window_bounds = array<i64: 3, 128>}, {pipeline_mode = #tpu.pipeline_mode<synchronous>, transform_indices = @transform_1, window_bounds = array<i64: 128, 3>}, {pipeline_mode = #tpu.pipeline_mode<synchronous>, transform_indices = @transform_2, window_bounds = array<i64: 128, 1>}, {pipeline_mode = #tpu.pipeline_mode<synchronous>, transform_indices = @transform_3, window_bounds = array<i64: 128, 128>}, {pipeline_mode = #tpu.pipeline_mode<synchronous>, transform_indices = @transform_4, window_bounds = array<i64: 128, 1>}, {pipeline_mode = #tpu.pipeline_mode<synchronous>, transform_indices = @transform_5, window_bounds = array<i64: 4, 128>}, {pipeline_mode = #tpu.pipeline_mode<synchronous>, transform_indices = @transform_6, window_bounds = array<i64: 4, 1>}, {transform_indices = @transform_7, window_bounds = array<i64: 4, 128>}]} {
    %c0 = arith.constant 0 : index
    %c0_0 = arith.constant 0 : index
    %0 = vector.load %arg1[%c0, %c0_0] : memref<3x128xf32, #tpu.memory_space<vmem>>, vector<3x128xf32>
    %c0_1 = arith.constant 0 : index
    %c0_2 = arith.constant 0 : index
    %1 = vector.load %arg2[%c0_1, %c0_2] : memref<128x3xf32, #tpu.memory_space<vmem>>, vector<128x3xf32>
    %2 = vector.extract_strided_slice %1 {offsets = [0, 0], sizes = [128, 1], strides = [1, 1]} : vector<128x3xf32> to vector<128x1xf32>
    %3 = vector.extract_strided_slice %0 {offsets = [0, 0], sizes = [1, 128], strides = [1, 1]} : vector<3x128xf32> to vector<1x128xf32>
    %4 = vector.broadcast %2 : vector<128x1xf32> to vector<128x128xf32>
    %5 = vector.broadcast %3 : vector<1x128xf32> to vector<128x128xf32>
    %6 = arith.mulf %4, %5 : vector<128x128xf32>
    %7 = vector.extract_strided_slice %1 {offsets = [0, 1], sizes = [128, 1], strides = [1, 1]} : vector<128x3xf32> to vector<128x1xf32>
    %8 = vector.extract_strided_slice %0 {offsets = [1, 0], sizes = [1, 128], strides = [1, 1]} : vector<3x128xf32> to vector<1x128xf32>
    %9 = vector.broadcast %7 : vector<128x1xf32> to vector<128x128xf32>
    %10 = vector.broadcast %8 : vector<1x128xf32> to vector<128x128xf32>
    %11 = arith.mulf %9, %10 : vector<128x128xf32>
    %12 = arith.addf %6, %11 : vector<128x128xf32>
    %13 = vector.extract_strided_slice %1 {offsets = [0, 2], sizes = [128, 1], strides = [1, 1]} : vector<128x3xf32> to vector<128x1xf32>
    %14 = vector.extract_strided_slice %0 {offsets = [2, 0], sizes = [1, 128], strides = [1, 1]} : vector<3x128xf32> to vector<1x128xf32>
    %15 = vector.broadcast %13 : vector<128x1xf32> to vector<128x128xf32>
    %16 = vector.broadcast %14 : vector<1x128xf32> to vector<128x128xf32>
    %17 = arith.mulf %15, %16 : vector<128x128xf32>
    %18 = arith.addf %12, %17 : vector<128x128xf32>
    %c0_3 = arith.constant 0 : index
    %c0_4 = arith.constant 0 : index
    %19 = vector.load %arg3[%c0_3, %c0_4] : memref<128x1xf32, #tpu.memory_space<vmem>>, vector<128x1xf32>
    %20 = vector.broadcast %19 : vector<128x1xf32> to vector<128x128xf32>
    %21 = arith.addf %18, %20 : vector<128x128xf32>
    %22 = math.tanh %21 : vector<128x128xf32>
    %c0_5 = arith.constant 0 : index
    %c0_6 = arith.constant 0 : index
    %23 = vector.load %arg4[%c0_5, %c0_6] : memref<128x128xf32, #tpu.memory_space<vmem>>, vector<128x128xf32>
    %cst = arith.constant dense<0.000000e+00> : vector<128x128xf32>
    %24 = tpu.matmul %23, %22, %cst {dimension_numbers = #tpu.dot_dimension_numbers<[1], [0], [0], [1], [0, 0, 1, 1], [], []>} : vector<128x128xf32>, vector<128x128xf32>, vector<128x128xf32> -> vector<128x128xf32>
    %c0_7 = arith.constant 0 : index
    %c0_8 = arith.constant 0 : index
    %25 = vector.load %arg5[%c0_7, %c0_8] : memref<128x1xf32, #tpu.memory_space<vmem>>, vector<128x1xf32>
    %26 = vector.broadcast %25 : vector<128x1xf32> to vector<128x128xf32>
    %27 = arith.addf %24, %26 : vector<128x128xf32>
    %28 = math.tanh %27 : vector<128x128xf32>
    %c0_9 = arith.constant 0 : index
    %c0_10 = arith.constant 0 : index
    %29 = vector.load %arg6[%c0_9, %c0_10] : memref<4x128xf32, #tpu.memory_space<vmem>>, vector<4x128xf32>
    %cst_11 = arith.constant dense<0.000000e+00> : vector<4x128xf32>
    %30 = tpu.matmul %29, %28, %cst_11 {dimension_numbers = #tpu.dot_dimension_numbers<[1], [0], [0], [1], [0, 0, 1, 1], [], []>} : vector<4x128xf32>, vector<128x128xf32>, vector<4x128xf32> -> vector<4x128xf32>
    %c0_12 = arith.constant 0 : index
    %c0_13 = arith.constant 0 : index
    %31 = vector.load %arg7[%c0_12, %c0_13] : memref<4x1xf32, #tpu.memory_space<vmem>>, vector<4x1xf32>
    %32 = vector.broadcast %31 : vector<4x1xf32> to vector<4x128xf32>
    %33 = arith.addf %30, %32 : vector<4x128xf32>
    %c0_14 = arith.constant 0 : index
    %c0_15 = arith.constant 0 : index
    %34 = vector.load %arg8[%c0_14, %c0_15] : memref<4x128xf32, #tpu.memory_space<vmem>>, vector<4x128xf32>
    tpu.vector_store %arg8[%c0_14, %c0_15], %33 {strides = array<i32>} : memref<4x128xf32, #tpu.memory_space<vmem>>, vector<4x128xf32>,
    return
  }
  func.func @transform_0(%arg0: i32) -> (i32, i32) {
    %c0_i32 = arith.constant 0 : i32
    %c0_i32_0 = arith.constant 0 : i32
    return %c0_i32, %arg0 : i32, i32
  }
  func.func @transform_1(%arg0: i32) -> (i32, i32) {
    %c0_i32 = arith.constant 0 : i32
    %c0_i32_0 = arith.constant 0 : i32
    %c0_i32_1 = arith.constant 0 : i32
    return %c0_i32, %c0_i32_0 : i32, i32
  }
  func.func @transform_2(%arg0: i32) -> (i32, i32) {
    %c0_i32 = arith.constant 0 : i32
    %c0_i32_0 = arith.constant 0 : i32
    %c0_i32_1 = arith.constant 0 : i32
    return %c0_i32, %c0_i32_0 : i32, i32
  }
  func.func @transform_3(%arg0: i32) -> (i32, i32) {
    %c0_i32 = arith.constant 0 : i32
    %c0_i32_0 = arith.constant 0 : i32
    %c0_i32_1 = arith.constant 0 : i32
    return %c0_i32, %c0_i32_0 : i32, i32
  }
  func.func @transform_4(%arg0: i32) -> (i32, i32) {
    %c0_i32 = arith.constant 0 : i32
    %c0_i32_0 = arith.constant 0 : i32
    %c0_i32_1 = arith.constant 0 : i32
    return %c0_i32, %c0_i32_0 : i32, i32
  }
  func.func @transform_5(%arg0: i32) -> (i32, i32) {
    %c0_i32 = arith.constant 0 : i32
    %c0_i32_0 = arith.constant 0 : i32
    %c0_i32_1 = arith.constant 0 : i32
    return %c0_i32, %c0_i32_0 : i32, i32
  }
  func.func @transform_6(%arg0: i32) -> (i32, i32) {
    %c0_i32 = arith.constant 0 : i32
    %c0_i32_0 = arith.constant 0 : i32
    %c0_i32_1 = arith.constant 0 : i32
    return %c0_i32, %c0_i32_0 : i32, i32
  }
  func.func @transform_7(%arg0: i32) -> (i32, i32) {
    %c0_i32 = arith.constant 0 : i32
    %c0_i32_0 = arith.constant 0 : i32
    return %c0_i32, %arg0 : i32, i32
  }
}

</mosaic_0001>

<bundles_post_ra>
// kernel: gpt_forward_t.1
= control target key start
LH: loop header
LB: loop body
LE: loop exit
PB: predicated region body
PF: predicated region fallthrough
CT: control target
= control target key end

     0   :  { %12 = vsyncpa [#allocation3], 0  ;;  %s2033_s0 = inlined_call_operand.vmem [shape: f32[3,512], index: 0, kind: input, shape index: {}]   ;;  %s2034_s1 = inlined_call_operand.vmem [shape: f32[128,3], index: 1, kind: input, shape index: {}]   ;;  %s2035_s2 = inlined_call_operand.vmem [shape: f32[128,1], index: 2, kind: input, shape index: {}]   ;;  %s2036_s3 = inlined_call_operand.vmem [shape: f32[128,128], index: 3, kind: input, shape index: {}]   ;;  %s2037_s4 = inlined_call_operand.vmem [shape: f32[128,1], index: 4, kind: input, shape index: {}]   ;;  %s2038_s5 = inlined_call_operand.vmem [shape: f32[4,128], index: 5, kind: input, shape index: {}]   ;;  %s2039_s6 = inlined_call_operand.vmem [shape: f32[4,1], index: 6, kind: input, shape index: {}]   ;;  %s2040_s7 = inlined_call_operand.hbm [shape: f32[4,512], index: 7, kind: output, shape index: {}]  }
   0x1   :  { %14 = vsyncpa [#allocation3 + $0x1], 0  ;;  %s1596_s24 = smov 0   ;;  %s1598_s25 = smov 0  }
   0x2   :  { %s1600_s26 = smov 0   ;;  %s1602_s27 = smov 0  }
   0x3 LB: > { %s1617_s28 = sadd.s32 4294967295, %s1547_s27   ;;  %s1143_s29 = sadd.s32 4294967294, %s1547_s27   ;;  %s1547_s27 = sphi %s1602_s27, %s2046_s27   ;;  %s1543_s26 = sphi %s1600_s26, %s2045_s26   ;;  %s1539_s25 = sphi %s1598_s25, %s2044_s25   ;;  %s1535_s24 = sphi %s1596_s24, %s2043_s24  }
   0x4   : > { %s1621_s30 = sadd.s32 1, %s1547_s27   ;;  %s179_s8 = sadd.s32 1, %s1543_s26 }
   0x5   : > { %s176_s9 = ssub.s32 %s1547_s27, %s1621_s30  ;;  %p189_p0 = scmp.ne.s32.totalorder %s1543_s26, %s1539_s25 }
   0x6   : > { %p177_p1 = scmp.eq.s32.totalorder %s176_s9, 0  ;;  %p190_p2 = scmp.eq.s32.totalorder %s1617_s28, 3 }
   0x7   : > { %p195_p3 = scmp.ne.s32.totalorder %s1539_s25, %s1535_s24  ;;  %p196_p4 = scmp.eq.s32.totalorder %s1143_s29, 3 }
   0x8   : > { %s1632_s10 = scalar_select %p177_p1, %s1543_s26, %s179_s8  }
   0x9   : > { %p1634_p5 = por %p190_p2, %p189_p0  ;;  %p1638_p6 = por %p196_p4, %p195_p3 }
   0xa   : > { %p1146_p7 = scmp.ge.s32.totalorder %s1547_s27, 1  ;;  %p239_p8 = scmp.lt.s32.totalorder %s1547_s27, 5 }
   0xc   : > { %p240_p9 = pnand %p1146_p7, %p239_p8 }
   0xd   : > { %v275_v0 = vld [vmem:[%s2034_s1] sm:$0xff] (!%p240_p9)  ;;  %v1549_v1 = vmov (!%p240_p9), 2   ;;  %v1550_v2 = vmov (!%p240_p9), 1   ;;  %v277_v3 = vld [vmem:[%s2034_s1 + $0x10] sm:$0xff] (!%p240_p9)  ;;  %v276_v4 = vld [vmem:[%s2034_s1 + $0x8] sm:$0xff] (!%p240_p9)  ;;  %v1551_v7 = vmov (!%p240_p9), 0   ;;  %v371_v51 = vlaneseq (!%p240_p9) }
   0xe   : > { %243 = sbr.rel (%p240_p9) target bundleno = 828 (0x33c), region = 48  ;;  %1395 = vset.pattern.permute.xlu0 (!%p240_p9), %v1549_v1  ;;  %1394 = vset.pattern.permute.xlu1 (!%p240_p9), %v1550_v2  ;;  %v280_v5 = vld [vmem:[%s2034_s1 + $0x28] sm:$0xff] (!%p240_p9)  ;;  %v279_v6 = vld [vmem:[%s2034_s1 + $0x20] sm:$0xff] (!%p240_p9)  ;;  %v282_v8 = vld [vmem:[%s2034_s1 + $0x38] sm:$0xff] (!%p240_p9)  ;;  %p270_p10 = scmp.lt.s32.totalorder (!%p240_p9), %s1617_s28, 3  ;;  %vm1553_vm0 = vmmov (!%p240_p9), 0  }
   0xf   : > { %492 = vperm.xlu0 (!%p240_p9), %1395, %v275_v0   ;;  %392 = vperm.xlu1 (!%p240_p9), %1394, %v275_v0   ;;  %v1671_v9 = vld [vmem:[%s2034_s1 + $0x48] sm:$0xff] (!%p240_p9)  ;;  %v278_v10 = vld [vmem:[%s2034_s1 + $0x18] sm:$0xff] (!%p240_p9)  ;;  %v591_v14 = vld [vmem:[%s2035_s2] sm:$0xff] (!%p240_p9)  ;;  %v372_v55 = vshrl.u32 (!%p240_p9), %v371_v51, 7  ;;  %s267_s29 = sand.u32 (!%p240_p9), 1, %s1539_s25   ;;  %s1150_s9 = sshll.u32 (!%p240_p9), %s1617_s28, 6 }
  0x10   : > { %v1680_v11 = vld [vmem:[%s2034_s1 + $0x58] sm:$0xff] (!%p240_p9)  ;;  %v1686_v12 = vld [vmem:[%s2034_s1 + $0x68] sm:$0xff] (!%p240_p9)  ;;  %v281_v16 = vld [vmem:[%s2034_s1 + $0x30] sm:$0xff] (!%p240_p9)  ;;  %s1147_s8 = sshll.u32 (!%p240_p9), %s267_s29, 2  ;;  %s1991_s17 = scalar_lea.hbm (!%p240_p9), %s2040_s7, %s1150_s9 }
  0x11   : > { %v1693_v13 = vld [vmem:[%s2034_s1 + $0x78] sm:$0xff] (!%p240_p9)  ;;  %v592_v15 = vld [vmem:[%s2035_s2 + $0x8] sm:$0xff] (!%p240_p9)  ;;  %v593_v17 = vld [vmem:[%s2035_s2 + $0x10] sm:$0xff] (!%p240_p9)  ;;  %v457_v58 = vsub.s32 (!%p240_p9), 1, %v372_v55  ;;  %v373_v60 = vsub.s32 (!%p240_p9), 0, %v372_v55  ;;  %v557_v63 = vsub.s32 (!%p240_p9), 2, %v372_v55 }
  0x12   : > { %v595_v18 = vld [vmem:[%s2035_s2 + $0x20] sm:$0xff] (!%p240_p9)  ;;  %v594_v19 = vld [vmem:[%s2035_s2 + $0x18] sm:$0xff] (!%p240_p9)  ;;  %v597_v20 = vld [vmem:[%s2035_s2 + $0x30] sm:$0xff] (!%p240_p9)  ;;  %s269_s13 = scalar_lea.vmem (!%p240_p9), [#allocation2], %s1147_s8 }
  0x13   : > { %500 = vperm.xlu0 (!%p240_p9), %1395, %v277_v3   ;;  %396 = vperm.xlu1 (!%p240_p9), %1394, %v276_v4   ;;  %v599_v21 = vld [vmem:[%s2035_s2 + $0x40] sm:$0xff] (!%p240_p9)  ;;  %v601_v22 = vld [vmem:[%s2035_s2 + $0x50] sm:$0xff] (!%p240_p9)  ;;  %v596_v23 = vld [vmem:[%s2035_s2 + $0x28] sm:$0xff] (!%p240_p9)  ;;  %s1084_s14 = sshll.u32 (!%p240_p9), %s269_s13, 4  ;;  %s1993_s14 = int_to_ptr.vmem [resolvable:$true] %s1084_s14 }
  0x14   : > { %v283_v24 = vld [vmem:[%s2034_s1 + $0x40] sm:$0xff] (!%p240_p9)  ;;  %v606_v26 = vld [vmem:[%s2035_s2 + $0x78] sm:$0xff] (!%p240_p9)  ;;  %v736_v27 = vld [vmem:[%s2037_s4 + $0x8] sm:$0xff] (!%p240_p9)  ;;  %s1485_s19 = scalar_lea.vmem (!%p240_p9), %s1993_s14, 64 }
  0x15   : > { %v603_v25 = vld [vmem:[%s2035_s2 + $0x60] sm:$0xff]  ;;  %v738_v28 = vld [vmem:[%s2037_s4 + $0x18] sm:$0xff]  ;;  %v740_v29 = vld [vmem:[%s2037_s4 + $0x28] sm:$0xff]  ;;  %s271_s15 = scalar_select %p270_p10, %s1617_s28, 3 }
  0x16   : > { %v598_v30 = vld [vmem:[%s2035_s2 + $0x38] sm:$0xff]  ;;  %v285_v32 = vld [vmem:[%s2034_s1 + $0x50] sm:$0xff]  ;;  %v744_v33 = vld [vmem:[%s2037_s4 + $0x48] sm:$0xff]  ;;  %p1486_p11 = scmp.ne.s32.totalorder %s1993_s14, %s1485_s19  ;;  %s1555_s28 = smov [#allocation2]  }
  0x17   : > { %512 = vperm.xlu0 %1395, %v280_v5   ;;  %1396 = vset.pattern.permute.xlu1 %v1549_v1  ;;  %v742_v31 = vld [vmem:[%s2037_s4 + $0x38] sm:$0xff]  ;;  %v748_v35 = vld [vmem:[%s2037_s4 + $0x68] sm:$0xff]  ;;  %v287_v40 = vld [vmem:[%s2034_s1 + $0x60] sm:$0xff]  ;;  %s1148_s18 = sshll.u32 %s271_s15, 2  ;;  %s1489_s20 = sshll.u32 %s1555_s28, 4  ;;  %s1490_s20 = int_to_ptr.vmem [resolvable:$false] %s1489_s20 }
  0x18   : > { %496 = vperm.xlu1 %1396, %v276_v4   ;;  %v746_v34 = vld [vmem:[%s2037_s4 + $0x58] sm:$0xff]  ;;  %v600_v37 = vld [vmem:[%s2035_s2 + $0x48] sm:$0xff]  ;;  %v289_v54 = vld [vmem:[%s2034_s1 + $0x70] sm:$0xff]  ;;  %s273_s23 = scalar_lea.vmem %s2033_s0, %s1148_s18  ;;  %s1071_s18 = scalar_lea.sflag [#allocation3], %s267_s29 }
  0x19   : > { %v750_v36 = vld [vmem:[%s2037_s4 + $0x78] sm:$0xff]  ;;  %v274_v59 = vld [vmem:[%s273_s23] sm:$0x7]  ;;  %p1487_p12 = pnand %p1486_p11, %p1634_p5  ;;  %s1491_s21 = scalar_lea.vmem %s1490_s20, 128 }
  0x1a   : > { %v602_v50 = vld [vmem:[%s2035_s2 + $0x58] sm:$0xff]  ;;  %v719_v51 = vld [vmem:[%s2036_s3] sm:$0xff]  ;;  %p1492_p0 = scmp.lt.s32.totalorder %s1993_s14, %s1490_s20  ;;  %p1493_p1 = scmp.lt.s32.totalorder %s1491_s21, %s1485_s19 }
  0x1b   : > { %1403 = vset.pattern.permute.xlu0 %v1550_v2  ;;  %1234 = vmatprep.mubr.f32.mxu0 %v719_v51  ;;  %p1488_p13 = pneg %p1487_p12 }
  0x1c   : > { %408 = vperm.xlu0 %1403, %v279_v6   ;;  %1397 = vset.pattern.permute.xlu1 %v1551_v7  ;;  %p1494_p2 = por %p1493_p1, %p1492_p0 }
  0x1d   : > { %303 = vperm.xlu1 %1397, %v277_v3  }
  0x1e   : > { %p1495_p3 = pnand %p1494_p2, %p1488_p13 }
  0x20   : > { %420 = vperm.xlu0 %1403, %v282_v8  }
  0x21   : > { %1398 = vset.pattern.permute.xlu1 %v1550_v2 }
  0x22   : > { %400 = vperm.xlu1 %1398, %v277_v3   ;;  %v1825_v3 = vrot.slane %v274_v59, %v373_v60 }
  0x24   : > { %428 = vperm.xlu0 %1403, %v1671_v9  }
  0x26   : > { %404 = vperm.xlu1 %1398, %v278_v10  }
  0x28   : > { %436 = vperm.xlu0 %1403, %v1680_v11  }
  0x2a   : > { %1399 = vset.pattern.permute.xlu1 %v1549_v1 }
  0x2b   : > { %504 = vperm.xlu1 %1399, %v278_v10  }
  0x2c   : > { %444 = vperm.xlu0 %1403, %v1686_v12  }
  0x2f   : > { %1400 = vset.pattern.permute.xlu1 %v1551_v7 }
  0x30   : > { %452 = vperm.xlu0 %1403, %v1693_v13   ;;  %609 = vperm.xlu1 %1400, %v591_v14  }
  0x34   : > { %1418 = vset.pattern.permute.xlu0 %v1551_v7  ;;  %313 = vperm.xlu1 %1400, %v279_v6  }
  0x35   : > { %293 = vperm.xlu0 %1418, %v275_v0   ;;  %v1823_v0 = vrot.slane %v274_v59, %v457_v58 }
  0x38   : > { %318 = vperm.xlu1 %1400, %v280_v5  }
  0x39   : > { %298 = vperm.xlu0 %1418, %v276_v4  }
  0x3c   : > { %1401 = vset.pattern.permute.xlu1 %v1550_v2 }
  0x3d   : > { %308 = vperm.xlu0 %1418, %v278_v10   ;;  %412 = vperm.xlu1 %1401, %v280_v5   ;;  %v1829_v5 = vrot.slane %v274_v59, %v557_v63 }
  0x41   : > { %614 = vperm.xlu0 %1418, %v592_v15   ;;  %1402 = vset.pattern.permute.xlu1 %v1549_v1 }
  0x42   : > { %508 = vperm.xlu1 %1402, %v279_v6  }
  0x45   : > { %323 = vperm.xlu0 %1418, %v281_v16  }
  0x46   : > { %1404 = vset.pattern.permute.xlu1 %v1551_v7 }
  0x47   : > { %619 = vperm.xlu1 %1404, %v593_v17  }
  0x49   : > { %629 = vperm.xlu0 %1418, %v595_v18  }
  0x4b   : > { %624 = vperm.xlu1 %1404, %v594_v19  }
  0x4d   : > { %338 = vperm.xlu0 %1418, %v1671_v9  }
  0x4f   : > { %328 = vperm.xlu1 %1404, %v282_v8  }
  0x51   : > { %639 = vperm.xlu0 %1418, %v597_v20  }
  0x53   : > { %1405 = vset.pattern.permute.xlu1 %v1550_v2 }
  0x54   : > { %416 = vperm.xlu1 %1405, %v281_v16  }
  0x55   : > { %348 = vperm.xlu0 %1418, %v1680_v11  }
  0x58   : > { %1406 = vset.pattern.permute.xlu1 %v1549_v1 }
  0x59   : > { %649 = vperm.xlu0 %1418, %v599_v21   ;;  %516 = vperm.xlu1 %1406, %v281_v16  }
  0x5d   : > { %358 = vperm.xlu0 %1418, %v1686_v12   ;;  %520 = vperm.xlu1 %1406, %v282_v8  }
  0x61   : > { %659 = vperm.xlu0 %1418, %v601_v22   ;;  %1407 = vset.pattern.permute.xlu1 %v1551_v7 }
  0x62   : > { %634 = vperm.xlu1 %1407, %v596_v23  }
  0x65   : > { %368 = vperm.xlu0 %1418, %v1693_v13  }
  0x66   : > { %333 = vperm.xlu1 %1407, %v283_v24  }
  0x69   : > { %669 = vperm.xlu0 %1418, %v603_v25  }
  0x6a   : > { %1408 = vset.pattern.permute.xlu1 %v1550_v2 }
  0x6b   : > { %424 = vperm.xlu1 %1408, %v283_v24  }
  0x6d   : > { %684 = vperm.xlu0 %1418, %v606_v26  }
  0x6f   : > { %1409 = vset.pattern.permute.xlu1 %v1549_v1 }
  0x70   : > { %524 = vperm.xlu1 %1409, %v283_v24  }
  0x71   : > { %758 = vperm.xlu0 %1418, %v736_v27  }
  0x74   : > { %528 = vperm.xlu1 %1409, %v1671_v9  }
  0x75   : > { %768 = vperm.xlu0 %1418, %v738_v28  }
  0x78   : > { %1410 = vset.pattern.permute.xlu1 %v1551_v7 }
  0x79   : > { %778 = vperm.xlu0 %1418, %v740_v29   ;;  %644 = vperm.xlu1 %1410, %v598_v30  }
  0x7d   : > { %788 = vperm.xlu0 %1418, %v742_v31   ;;  %343 = vperm.xlu1 %1410, %v285_v32   ;;  %v735_v31 = vld [vmem:[%s2037_s4] sm:$0xff] }
  0x81   : > { %798 = vperm.xlu0 %1418, %v744_v33   ;;  %1411 = vset.pattern.permute.xlu1 %v1550_v2 }
  0x82   : > { %432 = vperm.xlu1 %1411, %v285_v32  }
  0x85   : > { %808 = vperm.xlu0 %1418, %v746_v34  }
  0x86   : > { %1412 = vset.pattern.permute.xlu1 %v1549_v1 }
  0x87   : > { %532 = vperm.xlu1 %1412, %v285_v32  }
  0x89   : > { %818 = vperm.xlu0 %1418, %v748_v35  }
  0x8b   : > { %536 = vperm.xlu1 %1412, %v1680_v11  }
  0x8d   : > { %828 = vperm.xlu0 %1418, %v750_v36   ;;  %v737_v36 = vld [vmem:[%s2037_s4 + $0x10] sm:$0xff] }
  0x8e   : > { %v393_v38 = vpop.permute.xlu1 %392  ;;  %v493_v39 = vpop.permute.xlu0 %492 }
  0x8f   : > { %1413 = vset.pattern.permute.xlu1 %v1551_v7  ;;  %v459_v8 = vmul.f32 %v1823_v0, %v393_v38  ;;  %v559_v9 = vmul.f32 %v1829_v5, %v493_v39 }
  0x90   : > { %654 = vperm.xlu1 %1413, %v600_v37  }
  0x92   : > { %v397_v41 = vpop.permute.xlu1 %396  ;;  %v1791_v42 = vpop.permute.xlu0 %500 }
  0x93   : > { %v460_v14 = vmul.f32 %v1823_v0, %v397_v41  ;;  %v561_v29 = vmul.f32 %v1829_v5, %v1791_v42  ;;  %v739_v41 = vld [vmem:[%s2037_s4 + $0x20] sm:$0xff] }
  0x94   : > { %353 = vperm.xlu1 %1413, %v287_v40  }
  0x96   : > { %v1793_v43 = vpop.permute.xlu0 %512 }
  0x97   : > { %v497_v44 = vpop.permute.xlu1 %496 }
  0x98   : > { %1414 = vset.pattern.permute.xlu1 %v1550_v2  ;;  %v560_v20 = vmul.f32 %v1829_v5, %v497_v44 }
  0x99   : > { %440 = vperm.xlu1 %1414, %v287_v40  }
  0x9b   : > { %v1796_v45 = vpop.permute.xlu0 %408 }
  0x9c   : > { %v304_v46 = vpop.permute.xlu1 %303  ;;  %v463_v59 = vmul.f32 %v1823_v0, %v1796_v45  ;;  %v747_v45 = vld [vmem:[%s2037_s4 + $0x60] sm:$0xff] }
  0x9d   : > { %1415 = vset.pattern.permute.xlu1 %v1549_v1  ;;  %v377_v24 = vmul.f32 %v1825_v3, %v304_v46 }
  0x9e   : > { %540 = vperm.xlu1 %1415, %v287_v40  }
  0x9f   : > { %v1799_v47 = vpop.permute.xlu0 %420 }
  0xa1   : > { %v401_v48 = vpop.permute.xlu1 %400 }
  0xa2   : > { %544 = vperm.xlu1 %1415, %v1686_v12   ;;  %v461_v21 = vmul.f32 %v1823_v0, %v401_v48 }
  0xa3   : > { %v1803_v49 = vpop.permute.xlu0 %428 }
  0xa5   : > { %v405_v52 = vpop.permute.xlu1 %404 }
  0xa6   : > { %1416 = vset.pattern.permute.xlu1 %v1551_v7  ;;  %v462_v30 = vmul.f32 %v1823_v0, %v405_v52 }
  0xa7   : > { %664 = vperm.xlu1 %1416, %v602_v50   ;;  %v1810_v53 = vpop.permute.xlu0 %436  ;;  %v741_v50 = vld [vmem:[%s2037_s4 + $0x30] sm:$0xff] }
  0xaa   : > { %v505_v56 = vpop.permute.xlu1 %504 }
  0xab   : > { %363 = vperm.xlu1 %1416, %v289_v54   ;;  %v1818_v57 = vpop.permute.xlu0 %444  ;;  %v562_v35 = vmul.f32 %v1829_v5, %v505_v56 }
  0xaf   : > { %1417 = vset.pattern.permute.xlu1 %v1550_v2  ;;  %v610_v61 = vpop.permute.xlu1 %609  ;;  %v1821_v62 = vpop.permute.xlu0 %452 }
  0xb0   : > { %448 = vperm.xlu1 %1417, %v289_v54  }
  0xb3   : > { %v1827_v4 = vpop.permute.xlu1 %313 }
  0xb4   : > { %v294_v6 = vpop.permute.xlu0 %293  ;;  %1419 = vset.pattern.permute.xlu1 %v1549_v1  ;;  %v604_v1 = vld [vmem:[%s2035_s2 + $0x68] sm:$0xff]  ;;  %v379_v60 = vmul.f32 %v1825_v3, %v1827_v4  ;;  %v564_v4 = vmul.f32 %v1829_v5, %v1793_v43 }
  0xb5   : > { %v375_v2 = vmul.f32 %v1825_v3, %v294_v6  ;;  %548 = vperm.xlu1 %1419, %v289_v54   ;;  %v743_v54 = vld [vmem:[%s2037_s4 + $0x40] sm:$0xff] }
  0xb7   : > { %v475_v10 = vadd.f32 %v459_v8, %v375_v2  ;;  %v1835_v11 = vpop.permute.xlu1 %318 }
  0xb8   : > { %v299_v12 = vpop.permute.xlu0 %298 }
  0xb9   : > { %v376_v15 = vmul.f32 %v1825_v3, %v299_v12  ;;  %552 = vperm.xlu1 %1419, %v1693_v13   ;;  %v575_v16 = vadd.f32 %v559_v9, %v475_v10  ;;  %v605_v13 = vld [vmem:[%s2035_s2 + $0x70] sm:$0xff]  ;;  %v380_v9 = vmul.f32 %v1825_v3, %v1835_v11  ;;  %v479_v10 = vadd.f32 %v463_v59, %v379_v60 }
  0xba   : > { %v749_v11 = vld [vmem:[%s2037_s4 + $0x70] sm:$0xff] }
  0xbb   : > { %v476_v17 = vadd.f32 %v460_v14, %v376_v15  ;;  %v687_v22 = vadd.f32 %v610_v61, %v575_v16  ;;  %v745_v61 = vld [vmem:[%s2037_s4 + $0x50] sm:$0xff] }
  0xbc   : > { %v309_v18 = vpop.permute.xlu0 %308  ;;  %v413_v19 = vpop.permute.xlu1 %412 }
  0xbd   : > { %1420 = vset.pattern.permute.xlu1 %v1551_v7  ;;  %v576_v23 = vadd.f32 %v560_v20, %v476_v17  ;;  %v378_v26 = vmul.f32 %v1825_v3, %v309_v18  ;;  %v477_v7 = vadd.f32 %v461_v21, %v377_v24  ;;  %1421 = vtanh.f32 %v687_v22  ;;  %v993_v20 = vld [vmem:[%s2039_s6] sm:$0xf] }
  0xbe   : > { %674 = vperm.xlu1 %1420, %v604_v1   ;;  %v464_v63 = vmul.f32 %v1823_v0, %v413_v19 }
  0xbf   : > { %v478_v32 = vadd.f32 %v462_v30, %v378_v26  ;;  %v577_v34 = vadd.f32 %v561_v29, %v477_v7  ;;  %v466_v7 = vmul.f32 %v1823_v0, %v1799_v47 }
  0xc0   : > { %v615_v25 = vpop.permute.xlu0 %614  ;;  %v480_v12 = vadd.f32 %v464_v63, %v380_v9 }
  0xc1   : > { %v688_v27 = vadd.f32 %v615_v25, %v576_v23  ;;  %v509_v28 = vpop.permute.xlu1 %508  ;;  %v578_v38 = vadd.f32 %v562_v35, %v478_v32 }
  0xc2   : > { %679 = vperm.xlu1 %1420, %v605_v13   ;;  %v563_v2 = vmul.f32 %v1829_v5, %v509_v28  ;;  %v580_v1 = vadd.f32 %v564_v4, %v480_v12 }
  0xc3   : > { %1423 = vtanh.f32 %v688_v27 }
  0xc4   : > { %v324_v56 = vpop.permute.xlu0 %323  ;;  %v579_v16 = vadd.f32 %v563_v2, %v479_v10 }
  0xc5   : > { %v381_v22 = vmul.f32 %v1825_v3, %v324_v56 }
  0xc6   : > { %753 = vperm.xlu1 %1420, %v735_v31   ;;  %v620_v33 = vpop.permute.xlu1 %619 }
  0xc7   : > { %v689_v37 = vadd.f32 %v620_v33, %v577_v34  ;;  %v1422_v42 = vpop.eup %1421 }
  0xc8   : > { %v630_v14 = vpop.permute.xlu0 %629 }
  0xc9   : > { %1425 = vtanh.f32 %v689_v37  ;;  %v691_v17 = vadd.f32 %v630_v14, %v579_v16 }
  0xca   : > { %763 = vperm.xlu1 %1420, %v737_v36   ;;  %v625_v39 = vpop.permute.xlu1 %624 }
  0xcb   : > { %v690_v40 = vadd.f32 %v625_v39, %v578_v38 }
  0xcc   : > { %v339_v26 = vpop.permute.xlu0 %338 }
  0xcd   : > { %v1424_v44 = vpop.eup %1423  ;;  %1427 = vtanh.f32 %v690_v40  ;;  %v384_v51 = vmul.f32 %v1825_v3, %v339_v26 }
  0xce   : > { %773 = vperm.xlu1 %1420, %v739_v41   ;;  %v329_v46 = vpop.permute.xlu1 %328  ;;  %v1293_v48 = vpack.c.bf16 %v1424_v44, %v1422_v42  ;;  %1429 = vtanh.f32 %v691_v17 }
  0xcf   : > { %v382_v30 = vmul.f32 %v1825_v3, %v329_v46 }
  0xd0   : > { %1294 = vmatprep.subr.bf16.mxu0 %v1293_v48  ;;  %v640_v35 = vpop.permute.xlu0 %639 }
  0xd1   : > { %1296 = vmatpush3.bf16.msra.mxu0 %v1293_v48  ;;  %v482_v34 = vadd.f32 %v466_v7, %v382_v30 }
  0xd2   : > { %783 = vperm.xlu1 %1420, %v741_v50   ;;  %v468_v50 = vmul.f32 %v1823_v0, %v1803_v49 }
  0xd3   : > { %v417_v52 = vpop.permute.xlu1 %416  ;;  %v1426_v55 = vpop.eup %1425 }
  0xd4   : > { %v465_v23 = vmul.f32 %v1823_v0, %v417_v52  ;;  %v349_v52 = vpop.permute.xlu0 %348  ;;  %v484_v59 = vadd.f32 %v468_v50, %v384_v51 }
  0xd6   : > { %793 = vperm.xlu1 %1420, %v743_v54   ;;  %v481_v29 = vadd.f32 %v465_v23, %v381_v22 }
  0xd7   : > { %v1428_v58 = vpop.eup %1427 }
  0xd8   : > { %v517_v6 = vpop.permute.xlu1 %516  ;;  %v1297_v8 = vpack.c.bf16 %v1428_v58, %v1426_v55  ;;  %v1430_v13 = vpop.eup %1429 }
  0xd9   : > { %v565_v25 = vmul.f32 %v1829_v5, %v517_v6  ;;  %v650_v63 = vpop.permute.xlu0 %649 }
  0xda   : > { %803 = vperm.xlu1 %1420, %v745_v61   ;;  %1298 = vmatprep.subr.bf16.mxu0 %v1297_v8 }
  0xdb   : > { %1300 = vmatpush3.bf16.msra.mxu0 %v1297_v8  ;;  %v581_v31 = vadd.f32 %v565_v25, %v481_v29 }
  0xdc   : > { %v521_v15 = vpop.permute.xlu1 %520 }
  0xdd   : > { %v566_v32 = vmul.f32 %v1829_v5, %v521_v15  ;;  %v693_v36 = vadd.f32 %v640_v35, %v581_v31  ;;  %v359_v16 = vpop.permute.xlu0 %358  ;;  %v474_v35 = vmul.f32 %v1823_v0, %v1821_v62 }
  0xde   : > { %813 = vperm.xlu1 %1420, %v747_v45  }
  0xdf   : > { %v582_v37 = vadd.f32 %v566_v32, %v482_v34 }
  0xe1   : > { %v635_v18 = vpop.permute.xlu1 %634  ;;  %v660_v23 = vpop.permute.xlu0 %659 }
  0xe2   : > { %v692_v19 = vadd.f32 %v635_v18, %v580_v1  ;;  %823 = vperm.xlu1 %1420, %v749_v11   ;;  %v470_v18 = vmul.f32 %v1823_v0, %v1810_v53 }
  0xe4   : > { %1431 = vtanh.f32 %v692_v19  ;;  %v386_v19 = vmul.f32 %v1825_v3, %v349_v52 }
  0xe5   : > { %v334_v43 = vpop.permute.xlu1 %333  ;;  %1433 = vtanh.f32 %v693_v36  ;;  %v369_v7 = vpop.permute.xlu0 %368 }
  0xe6   : > { %996 = vperm.xlu1 %1420, %v993_v20   ;;  %v383_v46 = vmul.f32 %v1825_v3, %v334_v43  ;;  %v486_v22 = vadd.f32 %v470_v18, %v386_v19  ;;  %v390_v36 = vmul.f32 %v1825_v3, %v369_v7  ;;  %v731_v18 = vld [vmem:[%s2036_s3 + $0x60] sm:$0xff]  ;;  %v732_v19 = vld [vmem:[%s2036_s3 + $0x68] sm:$0xff] }
  0xea   : > { %v425_v21 = vpop.permute.xlu1 %424 }
  0xeb   : > { %v467_v47 = vmul.f32 %v1823_v0, %v425_v21 }
  0xed   : > { %v483_v56 = vadd.f32 %v467_v47, %v383_v46 }
  0xee   : > { %v1432_v24 = vpop.eup %1431 }
  0xef   : > { %v525_v27 = vpop.permute.xlu1 %524  ;;  %v1301_v28 = vpack.c.bf16 %v1432_v24, %v1430_v13  ;;  %v1434_v42 = vpop.eup %1433 }
  0xf0   : > { %v567_v48 = vmul.f32 %v1829_v5, %v525_v27 }
  0xf1   : > { %1302 = vmatprep.subr.bf16.mxu0 %v1301_v28 }
  0xf2   : > { %1304 = vmatpush3.bf16.msra.mxu0 %v1301_v28  ;;  %v583_v58 = vadd.f32 %v567_v48, %v483_v56 }
  0xf3   : > { %v529_v33 = vpop.permute.xlu1 %528 }
  0xf4   : > { %v568_v60 = vmul.f32 %v1829_v5, %v529_v33  ;;  %v695_v6 = vadd.f32 %v650_v63, %v583_v58 }
  0xf6   : > { %v584_v8 = vadd.f32 %v568_v60, %v484_v59 }
  0xf8   : > { %v645_v38 = vpop.permute.xlu1 %644 }
  0xf9   : > { %v694_v39 = vadd.f32 %v645_v38, %v582_v37  ;;  %v472_v38 = vmul.f32 %v1823_v0, %v1818_v57 }
  0xfb   : > { %1435 = vtanh.f32 %v694_v39  ;;  %v388_v39 = vmul.f32 %v1825_v3, %v359_v16  ;;  %v727_v16 = vld [vmem:[%s2036_s3 + $0x40] sm:$0xff] }
  0xfc   : > { %v344_v40 = vpop.permute.xlu1 %343  ;;  %1437 = vtanh.f32 %v695_v6 }
  0xfd   : > { %v385_v14 = vmul.f32 %v1825_v3, %v344_v40  ;;  %v488_v48 = vadd.f32 %v472_v38, %v388_v39 }
 0x101   : > { %v433_v41 = vpop.permute.xlu1 %432 }
 0x102   : > { %v469_v45 = vmul.f32 %v1823_v0, %v433_v41  ;;  %v670_v41 = vpop.permute.xlu0 %669 }
 0x104   : > { %v485_v1 = vadd.f32 %v469_v45, %v385_v14  ;;  %v722_v45 = vld [vmem:[%s2036_s3 + $0x18] sm:$0xff]  ;;  %v725_v14 = vld [vmem:[%s2036_s3 + $0x30] sm:$0xff] }
 0x105   : > { %v1436_v44 = vpop.eup %1435 }
 0x106   : > { %v533_v54 = vpop.permute.xlu1 %532  ;;  %v1305_v55 = vpack.c.bf16 %v1436_v44, %v1434_v42  ;;  %v1438_v4 = vpop.eup %1437  ;;  %v490_v44 = vadd.f32 %v474_v35, %v390_v36 }
 0x107   : > { %v569_v15 = vmul.f32 %v1829_v5, %v533_v54  ;;  %v685_v56 = vpop.permute.xlu0 %684 }
 0x108   : > { %1306 = vmatprep.subr.bf16.mxu0 %v1305_v55 }
 0x109   : > { %1308 = vmatpush3.bf16.msra.mxu0 %v1305_v55  ;;  %v585_v20 = vadd.f32 %v569_v15, %v485_v1  ;;  %v726_v15 = vld [vmem:[%s2036_s3 + $0x38] sm:$0xff] }
 0x10a   : > { %v537_v61 = vpop.permute.xlu1 %536  ;;  %v730_v1 = vld [vmem:[%s2036_s3 + $0x58] sm:$0xff] }
 0x10b   : > { %v570_v43 = vmul.f32 %v1829_v5, %v537_v61  ;;  %v697_v13 = vadd.f32 %v660_v23, %v585_v20  ;;  %v733_v20 = vld [vmem:[%s2036_s3 + $0x70] sm:$0xff]  ;;  %v759_v23 = vpop.permute.xlu0 %758 }
 0x10d   : > { %v586_v24 = vadd.f32 %v570_v43, %v486_v22  ;;  %v734_v43 = vld [vmem:[%s2036_s3 + $0x78] sm:$0xff]  ;;  %v1554_v22 = vmov 0.0  }
 0x10e   : > { %1290 = vmatprep.mubr.msk.f32.mxu1 %vm1553_vm0, %v1554_v22 }
 0x10f   : > { %v655_v2 = vpop.permute.xlu1 %654 }
 0x110   : > { %v696_v9 = vadd.f32 %v655_v2, %v584_v8 }
 0x112   : > { %1439 = vtanh.f32 %v696_v9 }
 0x113   : > { %v354_v49 = vpop.permute.xlu1 %353  ;;  %1441 = vtanh.f32 %v697_v13 }
 0x114   : > { %v387_v31 = vmul.f32 %v1825_v3, %v354_v49  ;;  %v720_v49 = vld [vmem:[%s2036_s3 + $0x8] sm:$0xff] }
 0x118   : > { %v441_v10 = vpop.permute.xlu1 %440 }
 0x119   : > { %v471_v53 = vmul.f32 %v1823_v0, %v441_v10  ;;  %v721_v10 = vld [vmem:[%s2036_s3 + $0x10] sm:$0xff] }
 0x11b   : > { %v487_v37 = vadd.f32 %v471_v53, %v387_v31 }
 0x11c   : > { %v1440_v12 = vpop.eup %1439 }
 0x11d   : > { %v541_v17 = vpop.permute.xlu1 %540  ;;  %v1309_v11 = vpack.c.bf16 %v1440_v12, %v1438_v4  ;;  %v1442_v29 = vpop.eup %1441  ;;  %v723_v4 = vld [vmem:[%s2036_s3 + $0x20] sm:$0xff]  ;;  %v724_v12 = vld [vmem:[%s2036_s3 + $0x28] sm:$0xff] }
 0x11e   : > { %v571_v32 = vmul.f32 %v1829_v5, %v541_v17  ;;  %v728_v17 = vld [vmem:[%s2036_s3 + $0x48] sm:$0xff] }
 0x11f   : > { %1310 = vmatprep.subr.bf16.mxu0 %v1309_v11 }
 0x120   : > { %1312 = vmatpush3.bf16.msra.mxu0 %v1309_v11  ;;  %v587_v40 = vadd.f32 %v571_v32, %v487_v37  ;;  %v729_v11 = vld [vmem:[%s2036_s3 + $0x50] sm:$0xff] }
 0x121   : > { %v545_v21 = vpop.permute.xlu1 %544 }
 0x122   : > { %v572_v47 = vmul.f32 %v1829_v5, %v545_v21  ;;  %v699_v50 = vadd.f32 %v670_v41, %v587_v40  ;;  %v1552_v21 = vmov 0.0|0.0  }
 0x123   : > { %1325 = vmatprep.subr.bf16.mxu1 %v1552_v21 }
 0x124   : > { %v588_v54 = vadd.f32 %v572_v47, %v488_v48 }
 0x126   : > { %v665_v25 = vpop.permute.xlu1 %664 }
 0x127   : > { %v698_v26 = vadd.f32 %v665_v25, %v586_v24  ;;  %v769_v24 = vpop.permute.xlu0 %768 }
 0x129   : > { %1443 = vtanh.f32 %v698_v26 }
 0x12a   : > { %v364_v27 = vpop.permute.xlu1 %363  ;;  %1445 = vtanh.f32 %v699_v50 }
 0x12b   : > { %v389_v52 = vmul.f32 %v1825_v3, %v364_v27  ;;  %v779_v26 = vpop.permute.xlu0 %778 }
 0x12f   : > { %v449_v28 = vpop.permute.xlu1 %448 }
 0x130   : > { %v473_v62 = vmul.f32 %v1823_v0, %v449_v28 }
 0x132   : > { %v489_v58 = vadd.f32 %v473_v62, %v389_v52 }
 0x133   : > { %v1444_v30 = vpop.eup %1443 }
 0x134   : > { %v549_v33 = vpop.permute.xlu1 %548  ;;  %v1313_v34 = vpack.c.bf16 %v1444_v30, %v1442_v29  ;;  %v1446_v0 = vpop.eup %1445 }
 0x135   : > { %v573_v57 = vmul.f32 %v1829_v5, %v549_v33  ;;  %v789_v30 = vpop.permute.xlu0 %788 }
 0x136   : > { %1314 = vmatprep.subr.bf16.mxu0 %v1313_v34 }
 0x137   : > { %1316 = vmatpush3.bf16.msra.mxu0 %v1313_v34  ;;  %v589_v61 = vadd.f32 %v573_v57, %v489_v58 }
 0x138   : > { %v553_v42 = vpop.permute.xlu1 %552 }
 0x139   : > { %v574_v46 = vmul.f32 %v1829_v5, %v553_v42  ;;  %v799_v39 = vpop.permute.xlu0 %798 }
 0x13b   : > { %v590_v51 = vadd.f32 %v574_v46, %v490_v44 }
 0x13d   : > { %v675_v55 = vpop.permute.xlu1 %674  ;;  %v702_v60 = vadd.f32 %v685_v56, %v590_v51  ;;  %v809_v51 = vpop.permute.xlu0 %808 }
 0x13e   : > { %v700_v59 = vadd.f32 %v675_v55, %v588_v54 }
 0x140   : > { %1447 = vtanh.f32 %v700_v59 }
 0x141   : > { %v680_v63 = vpop.permute.xlu1 %679  ;;  %1449 = vtanh.f32 %v702_v60 }
 0x142   : > { %v701_v6 = vadd.f32 %v680_v63, %v589_v61 }
 0x144   : > { %1451 = vtanh.f32 %v701_v6 }
 0x145   : > { %v754_v13 = vpop.permute.xlu1 %753 }
 0x149   : > { %v764_v25 = vpop.permute.xlu1 %763 }
 0x14a   : > { %v1448_v8 = vpop.eup %1447 }
 0x14b   : > { %v1317_v2 = vpack.c.bf16 %v1448_v8, %v1446_v0  ;;  %v1450_v9 = vpop.eup %1449 }
 0x14d   : > { %1318 = vmatprep.subr.bf16.mxu0 %v1317_v2  ;;  %v774_v27 = vpop.permute.xlu1 %773 }
 0x14e   : > { %v1452_v3 = vpop.eup %1451  ;;  %1320 = vmatpush3.bf16.msra.mxu0 %v1317_v2  ;;  %v819_v2 = vpop.permute.xlu0 %818 }
 0x14f   : > { %v1321_v5 = vpack.c.bf16 %v1450_v9, %v1452_v3 }
 0x151   : > { %1322 = vmatprep.subr.bf16.mxu0 %v1321_v5  ;;  %v784_v32 = vpop.permute.xlu1 %783 }
 0x152   : > { %1324 = vmatpush3.bf16.msra.mxu0 %v1321_v5 }
 0x155   : > { %1235 = vmatmul.mubr.f32.vlgmr.msra.gmra.mrb[0].mxu0 %v720_v49  ;;  %v794_v41 = vpop.permute.xlu1 %793 }
 0x156   : > { %1237 = vmatprep.mubr.f32.mxu0 %v721_v10 }
 0x159   : > { %1238 = vmatmul.mubr.f32.gmra.mrb[2].mxu0 %v722_v45  ;;  %v804_v54 = vpop.permute.xlu1 %803 }
 0x15a   : > { %1240 = vmatprep.mubr.f32.mxu0 %v723_v4 }
 0x15d   : > { %1241 = vmatmul.mubr.f32.gmra.mrb[4].mxu0 %v724_v12  ;;  %v814_v3 = vpop.permute.xlu1 %813 }
 0x15e   : > { %1243 = vmatprep.mubr.f32.mxu0 %v725_v14 }
 0x161   : > { %1244 = vmatmul.mubr.f32.gmra.mrb[6].mxu0 %v726_v15 }
 0x162   : > { %1246 = vmatprep.mubr.f32.mxu0 %v727_v16  ;;  %v829_v16 = vpop.permute.xlu0 %828 }
 0x165   : > { %1247 = vmatmul.mubr.f32.gmra.mrb[8].mxu0 %v728_v17 }
 0x166   : > { %1249 = vmatprep.mubr.f32.mxu0 %v729_v11 }
 0x169   : > { %1250 = vmatmul.mubr.f32.gmra.mrb[10].mxu0 %v730_v1  ;;  %v824_v1 = vpop.permute.xlu1 %823 }
 0x16a   : > { %1252 = vmatprep.mubr.f32.mxu0 %v731_v18 }
 0x16d   : > { %1253 = vmatmul.mubr.f32.gmra.mrb[12].mxu0 %v732_v19 }
 0x16e   : > { %1255 = vmatprep.mubr.f32.mxu0 %v733_v20 }
 0x171   : > { %1256 = vmatmul.mubr.f32.gmra.mrb[14].mxu0 %v734_v43 }
 0x228   : > { %v1236_v28 = vpop.f32.mrb[0].mxu0 }
 0x229   : > { %v903_v53 = vadd.f32 %v1236_v28, %v759_v23  ;;  %v897_v29 = vpop.f32.mrb[1].mxu0 }
 0x22a   : > { %v898_v7 = vadd.f32 %v897_v29, %v754_v13 }
 0x22b   : > { %1453 = vtanh.f32 %v903_v53 }
 0x22c   : > { %1455 = vtanh.f32 %v898_v7  ;;  %v1239_v31 = vpop.f32.mrb[2].mxu0  ;;  %v992_v7 = vld [vmem:[%s2038_s5] sm:$0xf] }
 0x22d   : > { %v913_v33 = vadd.f32 %v1239_v31, %v769_v24  ;;  %v907_v34 = vpop.f32.mrb[3].mxu0 }
 0x22e   : > { %v908_v35 = vadd.f32 %v907_v34, %v764_v25 }
 0x22f   : > { %1457 = vtanh.f32 %v913_v33 }
 0x230   : > { %1459 = vtanh.f32 %v908_v35  ;;  %v1242_v36 = vpop.f32.mrb[4].mxu0 }
 0x231   : > { %v923_v37 = vadd.f32 %v1242_v36, %v779_v26  ;;  %v917_v38 = vpop.f32.mrb[5].mxu0 }
 0x232   : > { %v918_v40 = vadd.f32 %v917_v38, %v774_v27 }
 0x233   : > { %1461 = vtanh.f32 %v923_v37 }
 0x234   : > { %1463 = vtanh.f32 %v918_v40  ;;  %v1245_v47 = vpop.f32.mrb[6].mxu0 }
 0x235   : > { %v1454_v42 = vpop.eup %1453  ;;  %v933_v44 = vadd.f32 %v1245_v47, %v789_v30  ;;  %v927_v46 = vpop.f32.mrb[7].mxu0 }
 0x236   : > { %v1456_v48 = vpop.eup %1455  ;;  %v928_v62 = vadd.f32 %v927_v46, %v784_v32  ;;  %v997_v30 = vpop.permute.xlu1 %996 }
 0x237   : > { %1465 = vtanh.f32 %v933_v44  ;;  %v1326_v50 = vpack.c.bf16 %v1454_v42, %v1456_v48 }
 0x238   : > { %1467 = vtanh.f32 %v928_v62  ;;  %v1248_v52 = vpop.f32.mrb[8].mxu0 }
 0x239   : > { %v1458_v57 = vpop.eup %1457  ;;  %v943_v55 = vadd.f32 %v1248_v52, %v799_v39  ;;  %v937_v56 = vpop.f32.mrb[9].mxu0  ;;  %1327 = vmatpush3.bf16.msra.mxu1 %v1326_v50 }
 0x23a   : > { %v1460_v58 = vpop.eup %1459  ;;  %v938_v59 = vadd.f32 %v937_v56, %v794_v41  ;;  %1328 = vmatprep.subr.bf16.mxu1 %v1552_v21 }
 0x23b   : > { %1469 = vtanh.f32 %v943_v55  ;;  %v1329_v60 = vpack.c.bf16 %v1458_v57, %v1460_v58 }
 0x23c   : > { %1471 = vtanh.f32 %v938_v59  ;;  %v1251_v61 = vpop.f32.mrb[10].mxu0 }
 0x23d   : > { %v1462_v63 = vpop.eup %1461  ;;  %v953_v6 = vadd.f32 %v1251_v61, %v809_v51  ;;  %v947_v0 = vpop.f32.mrb[11].mxu0  ;;  %1330 = vmatpush3.bf16.msra.mxu1 %v1329_v60 }
 0x23e   : > { %v1464_v8 = vpop.eup %1463  ;;  %v948_v9 = vadd.f32 %v947_v0, %v804_v54  ;;  %1331 = vmatprep.subr.bf16.mxu1 %v1552_v21 }
 0x23f   : > { %1473 = vtanh.f32 %v953_v6  ;;  %v1332_v5 = vpack.c.bf16 %v1462_v63, %v1464_v8 }
 0x240   : > { %1475 = vtanh.f32 %v948_v9  ;;  %v1254_v49 = vpop.f32.mrb[12].mxu0 }
 0x241   : > { %v1466_v10 = vpop.eup %1465  ;;  %v963_v45 = vadd.f32 %v1254_v49, %v819_v2  ;;  %v957_v4 = vpop.f32.mrb[13].mxu0  ;;  %1333 = vmatpush3.bf16.msra.mxu1 %v1332_v5 }
 0x242   : > { %v1468_v12 = vpop.eup %1467  ;;  %v958_v14 = vadd.f32 %v957_v4, %v814_v3  ;;  %1334 = vmatprep.subr.bf16.mxu1 %v1552_v21 }
 0x243   : > { %1477 = vtanh.f32 %v963_v45  ;;  %v1335_v15 = vpack.c.bf16 %v1466_v10, %v1468_v12 }
 0x244   : > { %1479 = vtanh.f32 %v958_v14  ;;  %v1257_v17 = vpop.f32.mrb[14].mxu0 }
 0x245   : > { %v1470_v11 = vpop.eup %1469  ;;  %v973_v18 = vadd.f32 %v1257_v17, %v829_v16  ;;  %v967_v19 = vpop.f32.mrb[15].mxu0  ;;  %1336 = vmatpush3.bf16.msra.mxu1 %v1335_v15 }
 0x246   : > { %v1472_v20 = vpop.eup %1471  ;;  %v968_v43 = vadd.f32 %v967_v19, %v824_v1  ;;  %1337 = vmatprep.subr.bf16.mxu1 %v1552_v21 }
 0x247   : > { %1481 = vtanh.f32 %v973_v18  ;;  %v1338_v22 = vpack.c.bf16 %v1470_v11, %v1472_v20 }
 0x248   : > { %1483 = vtanh.f32 %v968_v43 }
 0x249   : > { %v1474_v23 = vpop.eup %1473  ;;  %1339 = vmatpush3.bf16.msra.mxu1 %v1338_v22 }
 0x24a   : > { %v1476_v13 = vpop.eup %1475  ;;  %1340 = vmatprep.subr.bf16.mxu1 %v1552_v21 }
 0x24b   : > { %v1341_v24 = vpack.c.bf16 %v1474_v23, %v1476_v13 }
 0x24d   : > { %v1478_v25 = vpop.eup %1477  ;;  %1342 = vmatpush3.bf16.msra.mxu1 %v1341_v24 }
 0x24e   : > { %v1480_v26 = vpop.eup %1479  ;;  %1343 = vmatprep.subr.bf16.mxu1 %v1552_v21 }
 0x24f   : > { %v1344_v27 = vpack.c.bf16 %v1478_v25, %v1480_v26 }
 0x251   : > { %v1482_v28 = vpop.eup %1481  ;;  %1345 = vmatpush3.bf16.msra.mxu1 %v1344_v27 }
 0x252   : > { %v1484_v53 = vpop.eup %1483  ;;  %1346 = vmatprep.subr.bf16.mxu1 %v1552_v21 }
 0x253   : > { %v1347_v29 = vpack.c.bf16 %v1482_v28, %v1484_v53 }
 0x255   : > { %1348 = vmatpush3.bf16.msra.mxu1 %v1347_v29 }
 0x258   : > { %1291 = vmatmul.mubr.f32.vlgmr.msra.gmra.mrb[0].mxu1 %v992_v7 }
 0x32b   : > { %v1065_v31 = vpop.f32.mrb[0].mxu1 }
 0x32c   : > { %v1066_v32 = vadd.f32 %v1065_v31, %v997_v30  ;;  %v1292_v33 = vpop.f32.mrb[1].mxu1 }
 0x32e   : > { %1069 = vst [vmem:[%s269_s13] sm:$0xf] %v1066_v32 }
 0x32f   : > { %1498 = shalt.err (!%p1495_p3)
}
 0x330   : > { %s1499_s22 = scalar_lea.hbm %s1991_s17, 64  ;;  %s1503_s8 = scalar_lea.hbm %s2040_s7, 256 }
 0x331   : > { %p1500_p4 = scmp.ne.s32.totalorder %s1991_s17, %s1499_s22  ;;  %p1504_p9 = scmp.lt.u32.totalorder %s1991_s17, %s2040_s7 }
 0x332   : > { %p1505_p10 = scmp.lt.u32.totalorder %s1503_s8, %s1499_s22  ;;  %p1507_p12 = scmp.lt.u32.totalorder %s1499_s22, %s1991_s17 }
 0x333   : > { %p1501_p7 = pnand %p1500_p4, %p1634_p5 }
 0x334   : > { %p1506_p11 = por %p1505_p10, %p1504_p9 }
 0x335   : > { %p1502_p8 = pneg %p1501_p7 }
 0x336   : > { %p1508_p13 = por %p1507_p12, %p1506_p11 }
 0x338   : > { %p1509_p0 = pnand %p1508_p13, %p1502_p8 }
 0x33a   : > { %1512 = shalt.err (!%p1509_p0)
}
 0x33b   : > { %1349 = dma.vmem_to_hbm [thread:$0]  (%p1634_p5), %s1993_s14, 64, %s1991_s17, %s1071_s18  }
 0x33c PF: > { %p1355_p1 = scmp.ge.s32.totalorder %s1547_s27, 2  ;;  %s1096_s15 = sand.u32 1, %s1535_s24  }
 0x33d   : > { %s1097_s16 = scalar_lea.sflag [#allocation3], %s1096_s15 }
 0x33e   : > { %p1352_p2 = pnand %p1355_p1, %p1638_p6 }
 0x340   : > { %1530 = dma.done.wait (!%p1352_p2), %s1097_s16, 64  }
 0x341   : > { %1532 = vsyncadd (!%p1352_p2), %s1097_s16, 4294967232  ;;  %p17_p3 = scmp.ge.s32.totalorder %s1621_s30, 6   ;;  %s2043_s24 = smov %s1539_s25 }
 0x342   : > { %s2044_s25 = smov %s1543_s26  ;;  %s2045_s26 = smov %s1632_s10 }
 0x343   : > { %s2046_s27 = smov %s1621_s30  ;;  %19 = sbr.rel (!%p17_p3) target bundleno = 3 (0x3), region = 83 }
 0x34a   :  { %1102 = vsyncpa [#allocation3], 1 }
 0x34b   :  { %1104 = vsyncpa [#allocation3 + $0x1], 1 }

</bundles_post_ra>
